<compile_context>
chip_gen: v5e
topology: v5e:2x2
jax: 0.10.0
libtpu: 0.0.40
codegen_flags: <defaults>
</compile_context>

<pallas_src>
import numpy as np
import jax
import jax.numpy as jnp
from jax.experimental import pallas as pl
from jax.experimental.pallas import tpu as pltpu


# ----------------------------- kernels --------------------------------------


def _make_matmul_kernel(precision):
    def kernel(x_ref, e_ref, o_ref):
        # out[r, :] = x[r, :] @ E  -- E is the constant 0/1 replication matrix that
        # duplicates every input column into its four output columns (2x width, plus
        # the duplicated image row placed in the second half of the 4W chunk).
        o_ref[...] = jnp.dot(
            x_ref[...],
            e_ref[...],
            preferred_element_type=jnp.float32,
            precision=precision,
        ).astype(o_ref.dtype)

    return kernel


def _interleave_kernel(x_ref, o_ref):
    # TODO(synk): fallback for integer dtypes only (v7x MXU has no int mode):
    # width interleave on VALU/XLU + two lane-offset stores (the proven v1 kernel).
    x = x_ref[...]
    tr, w = x.shape
    xw = jnp.broadcast_to(x[:, :, None], (tr, w, 2)).reshape(tr, 2 * w)
    o_ref[:, 0 : 2 * w] = xw
    o_ref[:, 2 * w : 4 * w] = xw


# ----------------------------- tiling helpers --------------------------------


def _pick_group_rows(h, w):
    """Smallest divisor G of H with 4*G*W >= 128 (lane-dense output stores)."""
    if 4 * w >= 128:
        return 1
    for g in range(1, h + 1):
        if h % g == 0 and 4 * g * w >= 128:
            return g
    return h


def _vmem_budget():
    """(target working-set bytes, vmem_limit_bytes) tuned per TPU generation."""
    try:
        cap = pltpu.get_tpu_info().vmem_capacity_bytes
    except Exception:
        cap = 64 << 20  # conservative default: v7x per-TensorCore VMEM
    if cap >= (100 << 20):  # v5e / v6e: 128 MiB VMEM -> bigger slabs
        return 44 << 20, 96 << 20
    return 20 << 20, 48 << 20  # v7x: 64 MiB per TensorCore


def _pick_block_rows(n_rows, lane_cols, itemsize, target_bytes):
    """Rows per grid step; double-buffered in+out ~= 10 * TR * lane_cols * itemsize."""
    # Dtype-aware sublane granularity of packed tiles: f32 -> 8, bf16 -> 16, int8 -> 32.
    align = max(8, 32 // itemsize)
    cap = target_bytes // (10 * lane_cols * itemsize)
    cap = max(align, (cap // align) * align)

    # On large problems keep >= 4 grid steps: DMA/compute overlap and 2-TensorCore
    # sharding of the "parallel" axis on v7x.  Skipped for small problems.
    quarter = ((n_rows // 4) // align) * align
    if quarter >= 256:
        cap = min(cap, quarter)

    if n_rows <= cap:
        return n_rows  # full-extent block: always layout-legal

    # Accept an exact divisor (no ragged tail) only if it is big enough to keep the
    # ~0.35us/step pipeline overhead amortized (avoids the R = 8*prime -> TR = 8
    # pathology); otherwise take a non-dividing aligned block and let Pallas mask
    # the ragged tail.
    min_ok = max(cap // 2, 512)
    best = 0
    d = 1
    while d * d <= n_rows:
        if n_rows % d == 0:
            for c in (d, n_rows // d):
                if min_ok <= c <= cap and c % align == 0 and c > best:
                    best = c
        d += 1
    return best if best else cap


def _replication_matrix(w, g, dtype):
    """Block-diagonal (G*W, 4*G*W) 0/1 matrix: col j of group g -> the 4 output cols."""
    gw = g * w
    e = np.zeros((gw, 4 * gw), dtype=np.float32)
    rows = np.arange(gw)
    gi, wi = rows // w, rows % w
    base = gi * 4 * w
    e[rows, base + 2 * wi] = 1.0
    e[rows, base + 2 * wi + 1] = 1.0
    e[rows, base + 2 * w + 2 * wi] = 1.0
    e[rows, base + 2 * w + 2 * wi + 1] = 1.0
    return jnp.asarray(e, dtype=dtype)


# ----------------------------- wrapper ---------------------------------------


def upsample_nearest_2x(x):
    """x: (N, C, H, W) -> (N, C, 2H, 2W), nearest-neighbor, scale factor 2."""
    N, C, H, W = x.shape
    dtype = jnp.dtype(x.dtype)
    itemsize = dtype.itemsize
    use_matmul = dtype in (jnp.dtype(jnp.float32), jnp.dtype(jnp.bfloat16))

    G = _pick_group_rows(H, W) if use_matmul else 1
    GW = G * W
    R2 = (N * C * H) // G
    x2 = x.reshape(R2, GW)  # pure metadata reshape for contiguous NCHW input

    target_bytes, vmem_limit = _vmem_budget()
    e_bytes = GW * 4 * GW * itemsize if use_matmul else 0
    target_bytes = max(target_bytes - 2 * e_bytes, 4 << 20)
    TR = _pick_block_rows(R2, GW, itemsize, target_bytes)
    grid = (pl.cdiv(R2, TR),)

    in_specs = [pl.BlockSpec((TR, GW), lambda i: (i, 0))]
    args = [x2]
    if use_matmul:
        E = _replication_matrix(W, G, dtype)
        # Constant block index -> E is fetched once and stays VMEM-resident.
        in_specs.append(pl.BlockSpec((GW, 4 * GW), lambda i: (0, 0)))
        args.append(E)
        # HIGHEST makes the multi-pass bf16 decomposition of f32 operands exact for
        # 0/1 weights (bit-exact copy); bf16 inputs are already exact single-pass.
        precision = (
            jax.lax.Precision.HIGHEST
            if dtype == jnp.dtype(jnp.float32)
            else jax.lax.Precision.DEFAULT
        )
        kernel = _make_matmul_kernel(precision)
        flops = 2 * R2 * GW * (4 * GW)
    else:
        kernel = _interleave_kernel
        flops = 0

    # NOTE: pipeline_mode=pl.Buffered(3) on the input spec is a possible further
    # sweep (input is 1/10 of the working set); left at the default depth of 2.
    out2 = pl.pallas_call(
        kernel,
        out_shape=jax.ShapeDtypeStruct((R2, 4 * GW), x.dtype),
        grid_spec=pltpu.PrefetchScalarGridSpec(
            num_scalar_prefetch=0,
            grid=grid,
            in_specs=in_specs,
            out_specs=pl.BlockSpec((TR, 4 * GW), lambda i: (i, 0)),
        ),
        compiler_params=pltpu.CompilerParams(
            dimension_semantics=("parallel",),  # shards across v7x's 2 TensorCores
            vmem_limit_bytes=vmem_limit,
        ),
        cost_estimate=pl.CostEstimate(
            flops=flops,
            transcendentals=0,
            bytes_accessed=5 * R2 * GW * itemsize + e_bytes,  # read X, write 4X (+E)
        ),
    )(*args)

    # (R2, 4GW) -> (N, C, H/G, G, 2, 2W) -> (N, C, 2H, 2W): pure metadata reshape.
    return out2.reshape(N, C, 2 * H, 2 * W)


# ----------------------------- test ------------------------------------------

if __name__ == "__main__":
    key = jax.random.PRNGKey(0)
    N, C, H, W = 2, 4, 16, 16
    x = jax.random.normal(key, (N, C, H, W), dtype=jnp.float32)

    y = upsample_nearest_2x(x)
    jax.block_until_ready(y)

    # Reference: pure JAX nearest-neighbor 2x upsample.
    ref = jnp.repeat(jnp.repeat(x, 2, axis=2), 2, axis=3)
    assert y.shape == (N, C, 2 * H, 2 * W)
    assert y.dtype == x.dtype
    err = float(jnp.max(jnp.abs(y.astype(jnp.float32) - ref.astype(jnp.float32))))
    # Exact copy expected (0/1 replication weights, HIGHEST-precision f32 path);
    # tiny tolerance only guards against sub-ulp accumulation-order effects.
    assert err <= 1e-6, f"max abs error {err}"

    print("KERNEL_OK")
</pallas_src>

<mosaic_0001>
module attributes {stable_mosaic.version = 11 : i64} {
  func.func @kernel(%arg0: i32, %arg1: memref<64x32xf32, #tpu.memory_space<vmem>>, %arg2: memref<32x128xf32, #tpu.memory_space<vmem>>, %arg3: memref<64x128xf32, #tpu.memory_space<vmem>>) attributes {dimension_semantics = [#tpu.dimension_semantics<parallel>], iteration_bounds = array<i64: 1>, scalar_prefetch = 0 : i64, scratch_operands = 0 : i64, tpu.core_type = #tpu.core_type<tc>, window_params = [{transform_indices = @transform_0, window_bounds = array<i64: 64, 32>}, {pipeline_mode = #tpu.pipeline_mode<synchronous>, transform_indices = @transform_1, window_bounds = array<i64: 32, 128>}, {transform_indices = @transform_2, window_bounds = array<i64: 64, 128>}]} {
    %c0 = arith.constant 0 : index
    %c0_0 = arith.constant 0 : index
    %0 = vector.load %arg1[%c0, %c0_0] : memref<64x32xf32, #tpu.memory_space<vmem>>, vector<64x32xf32>
    %c0_1 = arith.constant 0 : index
    %c0_2 = arith.constant 0 : index
    %1 = vector.load %arg2[%c0_1, %c0_2] : memref<32x128xf32, #tpu.memory_space<vmem>>, vector<32x128xf32>
    %cst = arith.constant dense<0.000000e+00> : vector<64x128xf32>
    %2 = tpu.matmul %0, %1, %cst {dimension_numbers = #tpu.dot_dimension_numbers<[1], [0], [0], [1], [0, 0, 1, 1], [], []>, precision = #tpu.contract_precision<fp32>} : vector<64x32xf32>, vector<32x128xf32>, vector<64x128xf32> -> vector<64x128xf32>
    %c0_3 = arith.constant 0 : index
    %c0_4 = arith.constant 0 : index
    %3 = vector.load %arg3[%c0_3, %c0_4] : memref<64x128xf32, #tpu.memory_space<vmem>>, vector<64x128xf32>
    tpu.vector_store %arg3[%c0_3, %c0_4], %2 {strides = array<i32>} : memref<64x128xf32, #tpu.memory_space<vmem>>, vector<64x128xf32>,
    return
  }
  func.func @transform_0(%arg0: i32) -> (i32, i32) {
    %c0_i32 = arith.constant 0 : i32
    %c0_i32_0 = arith.constant 0 : i32
    return %arg0, %c0_i32 : i32, i32
  }
  func.func @transform_1(%arg0: i32) -> (i32, i32) {
    %c0_i32 = arith.constant 0 : i32
    %c0_i32_0 = arith.constant 0 : i32
    %c0_i32_1 = arith.constant 0 : i32
    return %c0_i32, %c0_i32_0 : i32, i32
  }
  func.func @transform_2(%arg0: i32) -> (i32, i32) {
    %c0_i32 = arith.constant 0 : i32
    %c0_i32_0 = arith.constant 0 : i32
    return %arg0, %c0_i32 : i32, i32
  }
}

</mosaic_0001>

<bundles_post_ra>
// kernel: tpu_custom_call.1
= control target key start
LH: loop header
LB: loop body
LE: loop exit
PB: predicated region body
PF: predicated region fallthrough
CT: control target
= control target key end

     0   :  { %vm24_vm0 = vcmask 261120   ;;  %s706_s0 = inlined_call_operand.vmem [shape: f32[64,32], index: 0, kind: input, shape index: {}]   ;;  %s707_s1 = inlined_call_operand.vmem [shape: f32[32,128], index: 1, kind: input, shape index: {}]   ;;  %s708_s2 = inlined_call_operand.hbm [shape: f32[64,128], index: 2, kind: output, shape index: {}]  }
   0x1   :  { %v23_v0 = vld [vmem:[%s707_s1 + $0x18] sm:$0xff]  ;;  %v22_v1 = vld [vmem:[%s707_s1 + $0x10] sm:$0xff]  ;;  %v21_v2 = vld [vmem:[%s707_s1 + $0x8] sm:$0xff] }
   0x2   :  { %v541_v3 = vand.u32 4294901760, %v23_v0  ;;  %v543_v4 = vand.u32 4294901760, %v22_v1  ;;  %v545_v5 = vand.u32 4294901760, %v21_v2  ;;  %v20_v6 = vld [vmem:[%s707_s1] sm:$0xff]  ;;  %v17_v8 = vld [vmem:[%s706_s0 + $0x28] sm:$0xff]  ;;  %v18_v13 = vld [vmem:[%s706_s0 + $0x30] sm:$0xff] }
   0x3   :  { %v16_v7 = vld [vmem:[%s706_s0 + $0x20] sm:$0xff]  ;;  %v556_v9 = vand.u32 4294901760, %v20_v6  ;;  %v41_v11 = vsel %vm24_vm0, %v17_v8, 0 }
   0x4   :  { %v38_v10 = vsel %vm24_vm0, %v16_v7, 0  ;;  %v12_v12 = vld [vmem:[%s706_s0] sm:$0xff]  ;;  %477 = vmatpush.msra.mxu2 %v541_v3  ;;  %v147_v14 = vsub.f32 %v23_v0, %v541_v3  ;;  %v153_v16 = vsub.f32 %v22_v1, %v543_v4  ;;  %v159_v17 = vsub.f32 %v21_v2, %v545_v5  ;;  %62 = vmatpush.msra.mxu0 %v541_v3 }
   0x5   :  { %v568_v15 = vand.u32 4294901760, %v38_v10 }
   0x6   :  { %7 = vsyncpa [#allocation3], 0  ;;  %v574_v18 = vsub.f32 %v20_v6, %v556_v9  ;;  %v576_v19 = vand.u32 4294901760, %v41_v11  ;;  %v26_v20 = vsel %vm24_vm0, %v12_v12, 0  ;;  %v44_v21 = vsel %vm24_vm0, %v18_v13, 0  ;;  %478 = vmatpush.msra.mxu2 %v543_v4  ;;  %64 = vmatpush.msra.mxu0 %v543_v4  ;;  %v13_v36 = vld [vmem:[%s706_s0 + $0x8] sm:$0xff] }
   0x7   :  { %v148_v22 = vand.u32 4294901760, %v147_v14  ;;  %v582_v23 = vsub.f32 %v38_v10, %v568_v15  ;;  %v154_v24 = vand.u32 4294901760, %v153_v16  ;;  %v160_v25 = vand.u32 4294901760, %v159_v17  ;;  %v14_v37 = vld [vmem:[%s706_s0 + $0x10] sm:$0xff]  ;;  %v19_v46 = vld [vmem:[%s706_s0 + $0x38] sm:$0xff]  ;;  %s465_s7 = sshll.u32 %s708_s2, 4  ;;  %s466_s7 = int_to_ptr.hbm [resolvable:$true] %s465_s7 }
   0x8   :  { %v166_v26 = vand.u32 4294901760, %v574_v18  ;;  %v587_v27 = vsub.f32 %v41_v11, %v576_v19  ;;  %v589_v28 = vand.u32 4294901760, %v26_v20  ;;  %479 = vmatpush.msra.mxu2 %v545_v5  ;;  %66 = vmatpush.msra.mxu0 %v545_v5  ;;  %v600_v35 = vand.u32 4294901760, %v44_v21  ;;  %v15_v57 = vld [vmem:[%s706_s0 + $0x18] sm:$0xff]  ;;  %s514_s0 = smov [#allocation2]   ;;  %s515_s8 = smov 128  }
   0x9   :  { %v149_v29 = vsub.f32 %v147_v14, %v148_v22  ;;  %v103_v30 = vand.u32 4294901760, %v582_v23  ;;  %v155_v31 = vsub.f32 %v153_v16, %v154_v24  ;;  %v161_v32 = vsub.f32 %v159_v17, %v160_v25  ;;  %s463_s4 = sshll.u32 %s514_s0, 4  ;;  %s516_s9 = smov 8   ;;  %s464_s4 = int_to_ptr.vmem [resolvable:$true] %s463_s4 }
   0xa   :  { %v167_v33 = vsub.f32 %v574_v18, %v166_v26  ;;  %v598_v34 = vsub.f32 %v26_v20, %v589_v28  ;;  %480 = vmatpush.msra.mxu2 %v556_v9  ;;  %v111_v41 = vand.u32 4294901760, %v587_v27  ;;  %68 = vmatpush.msra.mxu0 %v556_v9  ;;  %v29_v45 = vsel %vm24_vm0, %v13_v36, 0 }
   0xb   :  { %v150_v38 = vand.u32 4294901760, %v149_v29  ;;  %v104_v39 = vsub.f32 %v582_v23, %v103_v30  ;;  %v156_v40 = vand.u32 4294901760, %v155_v31  ;;  %v162_v44 = vand.u32 4294901760, %v161_v32 }
   0xc   :  { %217 = vmatpush.msrb.mxu2 %v147_v14  ;;  %v71_v42 = vand.u32 4294901760, %v598_v34  ;;  %352 = vmatpush.msrb.mxu0 %v148_v22  ;;  %v32_v47 = vsel %vm24_vm0, %v14_v37, 0  ;;  %v623_v49 = vand.u32 4294901760, %v29_v45  ;;  %v168_v50 = vand.u32 4294901760, %v167_v33 }
   0xd   :  { %481 = vmatpush.msra.mxu3 %v150_v38  ;;  %v105_v43 = vand.u32 4294901760, %v104_v39  ;;  %151 = vmatpush.msra.mxu1 %v150_v38  ;;  %v112_v51 = vsub.f32 %v587_v27, %v111_v41  ;;  %v629_v52 = vsub.f32 %v44_v21, %v600_v35  ;;  %v631_v53 = vand.u32 4294901760, %v32_v47 }
   0xe   :  { %220 = vmatpush.msrb.mxu2 %v153_v16  ;;  %v72_v48 = vsub.f32 %v598_v34, %v71_v42  ;;  %356 = vmatpush.msrb.mxu0 %v154_v24  ;;  %v78_v55 = vsub.f32 %v29_v45, %v623_v49  ;;  %v47_v56 = vsel %vm24_vm0, %v19_v46, 0  ;;  %v35_v63 = vsel %vm24_vm0, %v15_v57, 0 }
   0xf   :  { %106 = vmatmul.f32.vlgmr.msra.gmra.mxu2 %v105_v43  ;;  %482 = vmatpush.msra.mxu3 %v156_v40  ;;  %v86_v59 = vsub.f32 %v32_v47, %v631_v53  ;;  %v113_v60 = vand.u32 4294901760, %v112_v51  ;;  %v119_v61 = vand.u32 4294901760, %v629_v52  ;;  %v640_v62 = vand.u32 4294901760, %v47_v56 }
  0x10   :  { %157 = vmatpush.msra.mxu1 %v156_v40  ;;  %v73_v54 = vand.u32 4294901760, %v72_v48  ;;  %223 = vmatpush.msrb.mxu2 %v159_v17  ;;  %v79_v58 = vand.u32 4294901760, %v78_v55  ;;  %v93_v6 = vand.u32 4294901760, %v35_v63 }
  0x11   :  { %483 = vmatpush.msra.mxu3 %v162_v44  ;;  %360 = vmatpush.msrb.mxu0 %v160_v25  ;;  %v87_v2 = vand.u32 4294901760, %v86_v59  ;;  %v120_v7 = vsub.f32 %v629_v52, %v119_v61  ;;  %v126_v8 = vsub.f32 %v47_v56, %v640_v62 }
  0x12   :  { %163 = vmatpush.msra.mxu1 %v162_v44  ;;  %74 = vmatmul.f32.vlgmr.msra.gmra.mxu0 %v73_v54  ;;  %v80_v0 = vsub.f32 %v78_v55, %v79_v58  ;;  %v94_v10 = vsub.f32 %v35_v63, %v93_v6 }
  0x13   :  { %484 = vmatpush.msra.mxu3 %v168_v50  ;;  %226 = vmatpush.msrb.mxu2 %v574_v18  ;;  %v121_v11 = vand.u32 4294901760, %v120_v7  ;;  %v127_v12 = vand.u32 4294901760, %v126_v8 }
  0x14   :  { %187 = vmatmul.f32.vlgmr.msra.gmra.mxu3 %v568_v15  ;;  %169 = vmatpush.msra.mxu1 %v168_v50  ;;  %v81_v1 = vand.u32 4294901760, %v80_v0  ;;  %v95_v14 = vand.u32 4294901760, %v94_v10 }
  0x15   :  { %281 = vmatpush.msrb.mxu3 %v541_v3  ;;  %171 = vmatmul.f32.vlgmr.msra.gmra.mxu1 %v589_v28 }
  0x16   :  { %411 = vmatpush.msrb.mxu1 %v541_v3  ;;  %364 = vmatpush.msrb.mxu0 %v166_v26  ;;  %v88_v3 = vsub.f32 %v86_v59, %v87_v2  ;;  %v96_v16 = vsub.f32 %v94_v10, %v95_v14 }
  0x17   :  { %114 = vmatmul.f32.gmra.mxu2 %v113_v60  ;;  %283 = vmatpush.msrb.mxu3 %v543_v4 }
  0x18   :  { %413 = vmatpush.msrb.mxu1 %v543_v4  ;;  %v89_v13 = vand.u32 4294901760, %v88_v3  ;;  %v128_v4 = vsub.f32 %v126_v8, %v127_v12 }
  0x19   :  { %285 = vmatpush.msrb.mxu3 %v545_v5 }
  0x1a   :  { %82 = vmatmul.f32.gmra.mxu0 %v81_v1  ;;  %415 = vmatpush.msrb.mxu1 %v545_v5  ;;  %v129_v17 = vand.u32 4294901760, %v128_v4  ;;  %v97_v5 = vand.u32 4294901760, %v96_v16 }
  0x1b   :  { %287 = vmatpush.msrb.mxu3 %v556_v9 }
  0x1c   :  { %191 = vmatmul.f32.gmra.mxu3 %v576_v19  ;;  %417 = vmatpush.msrb.mxu1 %v556_v9 }
  0x1d   :  { %175 = vmatmul.f32.gmra.mxu1 %v623_v49 }
  0x1f   :  { %122 = vmatmul.f32.gmra.mxu2 %v121_v11 }
  0x22   :  { %90 = vmatmul.f32.gmra.mxu0 %v89_v13 }
  0x24   :  { %195 = vmatmul.f32.gmra.mxu3 %v600_v35 }
  0x25   :  { %179 = vmatmul.f32.gmra.mxu1 %v631_v53 }
  0x27   :  { %130 = vmatmul.f32.gmra.mxu2 %v129_v17 }
  0x2a   :  { %98 = vmatmul.f32.gmra.mxu0 %v97_v5 }
  0x2c   :  { %199 = vmatmul.f32.gmra.mxu3 %v640_v62 }
  0x2d   :  { %183 = vmatmul.f32.gmra.mxu1 %v93_v6 }
  0x2f   :  { %229 = vmatmul.f32.vlgmr.msrb.gmra.mxu2 %v598_v34 }
  0x32   :  { %366 = vmatmul.f32.vlgmr.msrb.gmra.mxu0 %v589_v28 }
  0x34   :  { %291 = vmatmul.f32.vlgmr.msrb.gmra.mxu3 %v71_v42 }
  0x35   :  { %419 = vmatmul.f32.vlgmr.msrb.gmra.mxu1 %v589_v28 }
  0x37   :  { %234 = vmatmul.f32.gmra.mxu2 %v78_v55 }
  0x3a   :  { %370 = vmatmul.f32.gmra.mxu0 %v623_v49 }
  0x3c   :  { %297 = vmatmul.f32.gmra.mxu3 %v79_v58 }
  0x3d   :  { %423 = vmatmul.f32.gmra.mxu1 %v623_v49 }
  0x3f   :  { %239 = vmatmul.f32.gmra.mxu2 %v86_v59 }
  0x42   :  { %374 = vmatmul.f32.gmra.mxu0 %v631_v53 }
  0x44   :  { %303 = vmatmul.f32.gmra.mxu3 %v87_v2 }
  0x45   :  { %427 = vmatmul.f32.gmra.mxu1 %v631_v53 }
  0x47   :  { %244 = vmatmul.f32.gmra.mxu2 %v94_v10 }
  0x4a   :  { %378 = vmatmul.f32.gmra.mxu0 %v93_v6 }
  0x4c   :  { %309 = vmatmul.f32.gmra.mxu3 %v95_v14 }
  0x4d   :  { %431 = vmatmul.f32.gmra.mxu1 %v93_v6 }
  0x4f   :  { %249 = vmatmul.f32.gmra.mxu2 %v582_v23 }
  0x52   :  { %382 = vmatmul.f32.gmra.mxu0 %v568_v15 }
  0x54   :  { %315 = vmatmul.f32.gmra.mxu3 %v103_v30 }
  0x55   :  { %435 = vmatmul.f32.gmra.mxu1 %v568_v15 }
  0x57   :  { %254 = vmatmul.f32.gmra.mxu2 %v587_v27 }
  0x5a   :  { %386 = vmatmul.f32.gmra.mxu0 %v576_v19 }
  0x5c   :  { %321 = vmatmul.f32.gmra.mxu3 %v111_v41 }
  0x5d   :  { %439 = vmatmul.f32.gmra.mxu1 %v576_v19 }
  0x5f   :  { %259 = vmatmul.f32.gmra.mxu2 %v629_v52 }
  0x62   :  { %390 = vmatmul.f32.gmra.mxu0 %v600_v35 }
  0x64   :  { %327 = vmatmul.f32.gmra.mxu3 %v119_v61 }
  0x65   :  { %443 = vmatmul.f32.gmra.mxu1 %v600_v35 }
  0x67   :  { %264 = vmatmul.f32.gmra.mxu2 %v126_v8 }
  0x6a   :  { %394 = vmatmul.f32.gmra.mxu0 %v640_v62 }
  0x6c   :  { %333 = vmatmul.f32.gmra.mxu3 %v127_v12 }
  0x6d   :  { %447 = vmatmul.f32.gmra.mxu1 %v640_v62 }
  0x8f   :  { %v75_v9 = vpop.f32.mrf.mxu0 }
  0x92   :  { %v107_v15 = vpop.f32.mrf.mxu2  ;;  %v172_v18 = vpop.f32.mrf.mxu1 }
  0x93   :  { %v173_v35 = vadd.f32 %v172_v18, %v75_v9 }
  0x97   :  { %v188_v20 = vpop.f32.mrf.mxu3  ;;  %v83_v19 = vpop.f32.mrf.mxu0 }
  0x98   :  { %v189_v3 = vadd.f32 %v188_v20, %v107_v15 }
  0x9a   :  { %v115_v21 = vpop.f32.mrf.mxu2  ;;  %v176_v22 = vpop.f32.mrf.mxu1 }
  0x9b   :  { %v177_v43 = vadd.f32 %v176_v22, %v83_v19 }
  0x9f   :  { %v192_v23 = vpop.f32.mrf.mxu3  ;;  %v91_v24 = vpop.f32.mrf.mxu0 }
  0xa0   :  { %v193_v17 = vadd.f32 %v192_v23, %v115_v21 }
  0xa2   :  { %v691_v25 = vpop.f32.mrf.mxu2  ;;  %v180_v26 = vpop.f32.mrf.mxu1 }
  0xa3   :  { %v181_v52 = vadd.f32 %v180_v26, %v91_v24 }
  0xa7   :  { %v693_v27 = vpop.f32.mrf.mxu3  ;;  %v99_v28 = vpop.f32.mrf.mxu0 }
  0xa8   :  { %v197_v15 = vadd.f32 %v693_v27, %v691_v25 }
  0xaa   :  { %v695_v29 = vpop.f32.mrf.mxu2  ;;  %v184_v30 = vpop.f32.mrf.mxu1 }
  0xab   :  { %v185_v61 = vadd.f32 %v184_v30, %v99_v28 }
  0xaf   :  { %v697_v31 = vpop.f32.mrf.mxu3  ;;  %v367_v32 = vpop.f32.mrf.mxu0 }
  0xb0   :  { %v201_v23 = vadd.f32 %v697_v31, %v695_v29 }
  0xb2   :  { %v230_v33 = vpop.f32.mrf.mxu2  ;;  %v420_v34 = vpop.f32.mrf.mxu1 }
  0xb3   :  { %v231_v36 = vadd.f32 %v230_v33, %v173_v35 }
  0xb7   :  { %v292_v37 = vpop.f32.mrf.mxu3  ;;  %v371_v38 = vpop.f32.mrf.mxu0 }
  0xb8   :  { %v293_v39 = vadd.f32 %v292_v37, %v231_v36 }
  0xba   :  { %v235_v40 = vpop.f32.mrf.mxu2  ;;  %v368_v41 = vadd.f32 %v367_v32, %v293_v39  ;;  %v424_v42 = vpop.f32.mrf.mxu1 }
  0xbb   :  { %v236_v45 = vadd.f32 %v235_v40, %v177_v43 }
  0xbc   :  { %v421_v44 = vadd.f32 %v420_v34, %v368_v41 }
  0xbe   :  { %451 = vst [vmem:[#allocation2] sm:$0xff] %v421_v44 }
  0xbf   :  { %v298_v46 = vpop.f32.mrf.mxu3  ;;  %v375_v47 = vpop.f32.mrf.mxu0 }
  0xc0   :  { %v299_v48 = vadd.f32 %v298_v46, %v236_v45 }
  0xc2   :  { %v240_v49 = vpop.f32.mrf.mxu2  ;;  %v372_v50 = vadd.f32 %v371_v38, %v299_v48  ;;  %v428_v51 = vpop.f32.mrf.mxu1 }
  0xc3   :  { %v241_v54 = vadd.f32 %v240_v49, %v181_v52 }
  0xc4   :  { %v425_v53 = vadd.f32 %v424_v42, %v372_v50 }
  0xc6   :  { %452 = vst [vmem:[#allocation2 + $0x8] sm:$0xff] %v425_v53 }
  0xc7   :  { %v304_v55 = vpop.f32.mrf.mxu3  ;;  %v379_v56 = vpop.f32.mrf.mxu0 }
  0xc8   :  { %v305_v57 = vadd.f32 %v304_v55, %v241_v54 }
  0xca   :  { %v245_v58 = vpop.f32.mrf.mxu2  ;;  %v376_v59 = vadd.f32 %v375_v47, %v305_v57  ;;  %v432_v60 = vpop.f32.mrf.mxu1 }
  0xcb   :  { %v246_v63 = vadd.f32 %v245_v58, %v185_v61 }
  0xcc   :  { %v429_v62 = vadd.f32 %v428_v51, %v376_v59 }
  0xce   :  { %453 = vst [vmem:[#allocation2 + $0x10] sm:$0xff] %v429_v62 }
  0xcf   :  { %v310_v0 = vpop.f32.mrf.mxu3  ;;  %v383_v2 = vpop.f32.mrf.mxu0 }
  0xd0   :  { %v311_v1 = vadd.f32 %v310_v0, %v246_v63 }
  0xd2   :  { %v250_v6 = vpop.f32.mrf.mxu2  ;;  %v380_v7 = vadd.f32 %v379_v56, %v311_v1  ;;  %v436_v8 = vpop.f32.mrf.mxu1 }
  0xd3   :  { %v251_v11 = vadd.f32 %v250_v6, %v189_v3 }
  0xd4   :  { %v433_v10 = vadd.f32 %v432_v60, %v380_v7 }
  0xd6   :  { %454 = vst [vmem:[#allocation2 + $0x18] sm:$0xff] %v433_v10 }
  0xd7   :  { %v316_v12 = vpop.f32.mrf.mxu3  ;;  %v387_v16 = vpop.f32.mrf.mxu0 }
  0xd8   :  { %v317_v13 = vadd.f32 %v316_v12, %v251_v11 }
  0xda   :  { %v255_v14 = vpop.f32.mrf.mxu2  ;;  %v384_v4 = vadd.f32 %v383_v2, %v317_v13  ;;  %v440_v9 = vpop.f32.mrf.mxu1 }
  0xdb   :  { %v256_v18 = vadd.f32 %v255_v14, %v193_v17 }
  0xdc   :  { %v437_v5 = vadd.f32 %v436_v8, %v384_v4 }
  0xde   :  { %455 = vst [vmem:[#allocation2 + $0x20] sm:$0xff] %v437_v5 }
  0xdf   :  { %v322_v19 = vpop.f32.mrf.mxu3  ;;  %v391_v28 = vpop.f32.mrf.mxu0 }
  0xe0   :  { %v323_v22 = vadd.f32 %v322_v19, %v256_v18 }
  0xe2   :  { %v260_v24 = vpop.f32.mrf.mxu2  ;;  %v388_v26 = vadd.f32 %v387_v16, %v323_v22  ;;  %v444_v33 = vpop.f32.mrf.mxu1 }
  0xe3   :  { %v261_v30 = vadd.f32 %v260_v24, %v197_v15 }
  0xe4   :  { %v441_v20 = vadd.f32 %v440_v9, %v388_v26 }
  0xe6   :  { %456 = vst [vmem:[#allocation2 + $0x28] sm:$0xff] %v441_v20 }
  0xe7   :  { %v328_v32 = vpop.f32.mrf.mxu3  ;;  %v395_v39 = vpop.f32.mrf.mxu0 }
  0xe8   :  { %v329_v34 = vadd.f32 %v328_v32, %v261_v30 }
  0xea   :  { %v392_v35 = vadd.f32 %v391_v28, %v329_v34  ;;  %v265_v21 = vpop.f32.mrf.mxu2  ;;  %v448_v25 = vpop.f32.mrf.mxu1 }
  0xeb   :  { %v266_v37 = vadd.f32 %v265_v21, %v201_v23 }
  0xec   :  { %v445_v36 = vadd.f32 %v444_v33, %v392_v35 }
  0xee   :  { %457 = vst [vmem:[#allocation2 + $0x30] sm:$0xff] %v445_v36 }
  0xef   :  { %v334_v38 = vpop.f32.mrf.mxu3 }
  0xf0   :  { %v335_v40 = vadd.f32 %v334_v38, %v266_v37 }
  0xf2   :  { %v396_v27 = vadd.f32 %v395_v39, %v335_v40 }
  0xf4   :  { %v449_v41 = vadd.f32 %v448_v25, %v396_v27 }
  0xf6   :  { %458 = vst [vmem:[#allocation2 + $0x38] sm:$0xff] %v449_v41 }
  0xf7   :  { %471 = dma.vmem_to_hbm [thread:$0]  %s464_s4, 1024, %s466_s7, [#allocation3], %s515_s8, %s515_s8, %s516_s9  }
  0xf8   :  { %512 = dma.done.wait [#allocation3], 1024  }
  0xf9   :  { %513 = vsyncadd [#allocation3], 4294966272 }
  0xfa   :  { %476 = vsyncpa [#allocation3], 1 }

</bundles_post_ra>
